<compile_context>
chip_gen: v5e
topology: v5e:2x2
jax: 0.10.0
libtpu: 0.0.40
codegen_flags: <defaults>
</compile_context>

<pallas_src>
import functools

import jax
import jax.numpy as jnp
from jax import lax
from jax.experimental import pallas as pl
from jax.experimental.pallas import tpu as pltpu

LANES = 128
CHUNK_ROWS = 256        # per-chunk live set: 256 x 128 f32 = 128 KiB
MAX_TILE_ROWS = 8192    # streaming block: 8192 x 128 f32 = 4 MiB (8 MiB double-buffered)
NUM_SHARDS = 2          # leading "parallel" axis -> both TensorCores on v7x


def _bce_elementwise(x, target_val):
    """Per-element BCE with PyTorch's -100 log clamp; target_val is a static float."""
    if target_val == 1.0:
        return -jnp.maximum(jnp.log(x), -100.0)
    if target_val == 0.0:
        return -jnp.maximum(jnp.log(1.0 - x), -100.0)
    log_x = jnp.maximum(jnp.log(x), -100.0)
    log_1mx = jnp.maximum(jnp.log(1.0 - x), -100.0)
    t = jnp.float32(target_val)
    return -(t * log_x + (1.0 - t) * log_1mx)


def _bce_kernel(x_ref, o_ref, *, target_val, total_n, tile_rows, chunk_rows,
                steps_per_shard):
    c = pl.program_id(0)                 # shard (TensorCore) index
    i = pl.program_id(1)                 # step within the shard
    tile_elems = tile_rows * LANES
    gstep = c * steps_per_shard + i      # UNclamped global row-tile index
    tile_base = gstep * tile_elems       # first flat element index of this tile

    @pl.when(i == 0)
    def _init():
        o_ref[...] = jnp.zeros_like(o_ref)

    def add_chunk(x_chunk, base_idx, masked):
        xf = x_chunk.astype(jnp.float32)
        if masked:
            row = lax.broadcasted_iota(jnp.int32, xf.shape, 0)
            lane = lax.broadcasted_iota(jnp.int32, xf.shape, 1)
            valid = (base_idx + row * LANES + lane) < total_n
            xf = jnp.where(valid, xf, 0.5)   # sanitize garbage/pad BEFORE the log
            loss = jnp.where(valid, _bce_elementwise(xf, target_val), 0.0)
        else:
            loss = _bce_elementwise(xf, target_val)
        # (r,128) -> (r/8, 8, 128): row-groups of 8 align exactly with vregs, so
        # the reduce over axis 0 is pure VPU adds into the (8,128) accumulator.
        o_ref[...] += loss.reshape(-1, 8, LANES).sum(axis=0)

    n_chunks = tile_rows // chunk_rows

    def run(masked):
        if n_chunks == 1:
            add_chunk(x_ref[...], tile_base, masked)
        else:
            def body(k, carry):
                r0 = pl.multiple_of(k * chunk_rows, chunk_rows)
                add_chunk(x_ref[pl.ds(r0, chunk_rows), :],
                          tile_base + r0 * LANES, masked)
                return carry
            lax.fori_loop(0, n_chunks, body, 0, unroll=(n_chunks <= 8))

    # Mask only tiles that may contain invalid elements (padding / OOB overrun /
    # phantom clamped steps); all other tiles take the mask-free fast path.
    needs_mask = (gstep + 1) * tile_elems > total_n

    @pl.when(needs_mask)
    def _masked():
        run(True)

    @pl.when(jnp.logical_not(needs_mask))
    def _clean():
        run(False)


def patch_disc_loss(input_var: jax.Array, target_val: float) -> jax.Array:
    """Pallas equivalent of PatchDiscLoss.forward(input_var, target_val).

    target_val must be a static Python number (the usual GAN label 0.0 / 1.0);
    it is baked into the kernel so only the needed log term is emitted.
    """
    target_val = float(target_val)

    x = jnp.ravel(input_var)
    if not jnp.issubdtype(x.dtype, jnp.floating):
        x = x.astype(jnp.float32)
    total_n = int(x.shape[0])

    rows_exact = pl.cdiv(max(total_n, 1), LANES)
    if rows_exact < CHUNK_ROWS:
        # Small input: one full-array row tile (any row count allowed when the
        # block equals the full dim); round rows to a multiple of 8 so the
        # in-kernel (r/8, 8, 128) reduce works. Padding here is tiny (<128 KiB).
        rows = max(((rows_exact + 7) // 8) * 8, 8)
        tile_rows = rows
        chunk_rows = rows
    else:
        # Large input: blocks are multiples of 256 rows (valid sublane multiple
        # for f32/bf16/i8); any row overrun of the last tile is masked in-kernel.
        rows = rows_exact
        tile_rows = (min(rows, MAX_TILE_ROWS) // CHUNK_ROWS) * CHUNK_ROWS
        chunk_rows = CHUNK_ROWS

    padded_n = rows * LANES
    if padded_n != total_n:
        # Only taken for non-multiple-of-128 lengths (or tiny inputs); pad value
        # 0.5 keeps logs finite and is masked out in-kernel.
        x = jnp.pad(x, (0, padded_n - total_n), constant_values=0.5)
    x2d = x.reshape(rows, LANES)

    total_steps = pl.cdiv(rows, tile_rows)
    num_shards = NUM_SHARDS if total_steps >= 2 else 1
    steps_per_shard = pl.cdiv(total_steps, num_shards)
    grid = (num_shards, steps_per_shard)

    def in_index_map(c, i):
        g = c * steps_per_shard + i
        # Clamp so a phantom trailing step never issues a fully-OOB DMA; its
        # contribution is zeroed by the element-index mask in the kernel.
        return (jnp.minimum(g, total_steps - 1), 0)

    kernel = functools.partial(
        _bce_kernel, target_val=target_val, total_n=total_n,
        tile_rows=tile_rows, chunk_rows=chunk_rows,
        steps_per_shard=steps_per_shard)

    n_logs = 1 if target_val in (0.0, 1.0) else 2
    cost = pl.CostEstimate(
        flops=4 * max(total_n, 1),
        transcendentals=n_logs * max(total_n, 1),
        bytes_accessed=padded_n * x2d.dtype.itemsize + num_shards * 8 * LANES * 4)

    partials = pl.pallas_call(
        kernel,
        out_shape=jax.ShapeDtypeStruct((num_shards * 8, LANES), jnp.float32),
        grid=grid,
        in_specs=[pl.BlockSpec((tile_rows, LANES), in_index_map)],
        out_specs=pl.BlockSpec((8, LANES), lambda c, i: (c, 0)),
        compiler_params=pltpu.CompilerParams(
            dimension_semantics=("parallel", "arbitrary"),
            vmem_limit_bytes=32 * 1024 * 1024),
        cost_estimate=cost,
    )(x2d)

    return jnp.sum(partials) / jnp.float32(total_n)


def _reference(input_var, target_val):
    xf = jnp.ravel(input_var).astype(jnp.float32)
    t = jnp.float32(target_val)
    log_x = jnp.maximum(jnp.log(xf), -100.0)
    log_1mx = jnp.maximum(jnp.log(1.0 - xf), -100.0)
    return jnp.mean(-(t * log_x + (1.0 - t) * log_1mx))


if __name__ == "__main__":
    key = jax.random.PRNGKey(0)
    k1, k2, k3, k4 = jax.random.split(key, 4)

    # Discriminator outputs are probabilities in (0, 1) (BCELoss expects that).
    x = jax.random.uniform(k1, (2, 4, 16, 16), dtype=jnp.float32,
                           minval=0.05, maxval=0.95)
    # Odd-sized input exercises the pad / masked-tail path.
    x_odd = jax.random.uniform(k2, (3, 5, 7, 11), dtype=jnp.float32,
                               minval=0.05, maxval=0.95)
    # bf16 input exercises native-dtype streaming with in-kernel f32 compute.
    x_bf16 = jax.random.uniform(k3, (2, 4, 16, 16), dtype=jnp.float32,
                                minval=0.05, maxval=0.95).astype(jnp.bfloat16)
    # Larger patch-map exercises big tiles, the 2-shard grid, the chunked
    # fori_loop accumulation and partial-OOB masking of the last tile.
    x_big = jax.random.uniform(k4, (2, 1, 760, 752), dtype=jnp.float32,
                               minval=0.05, maxval=0.95)

    cases = [
        (x, 1.0, 1e-5), (x, 0.0, 1e-5), (x, 0.3, 1e-5),
        (x_odd, 1.0, 1e-5), (x_odd, 0.0, 1e-5),
        (x_bf16, 1.0, 1e-5),
        (x_big, 1.0, 1e-4), (x_big, 0.0, 1e-4),
    ]
    for inp, tv, rtol in cases:
        loss = patch_disc_loss(inp, tv)
        jax.block_until_ready(loss)
        ref = _reference(inp, tv)
        assert jnp.allclose(loss, ref, rtol=rtol, atol=1e-6), (tv, loss, ref)

    print("KERNEL_OK")
</pallas_src>

<mosaic_0001>
module attributes {stable_mosaic.version = 11 : i64} {
  func.func @_bce_kernel(%arg0: i32, %arg1: i32, %arg2: memref<16x128xf32, #tpu.memory_space<vmem>>, %arg3: memref<8x128xf32, #tpu.memory_space<vmem>>) attributes {dimension_semantics = [#tpu.dimension_semantics<parallel>, #tpu.dimension_semantics<arbitrary>], iteration_bounds = array<i64: 1, 1>, scalar_prefetch = 0 : i64, scratch_operands = 0 : i64, tpu.core_type = #tpu.core_type<tc>, window_params = [{transform_indices = @transform_0, window_bounds = array<i64: 16, 128>}, {transform_indices = @transform_1, window_bounds = array<i64: 8, 128>}]} {
    %c1_i32 = arith.constant 1 : i32
    %0 = arith.muli %arg0, %c1_i32 : i32
    %1 = arith.addi %0, %arg1 : i32
    %c2048_i32 = arith.constant 2048 : i32
    %2 = arith.muli %1, %c2048_i32 : i32
    %c0_i32 = arith.constant 0 : i32
    %3 = arith.cmpi eq, %arg1, %c0_i32 : i32
    %4 = arith.extui %3 : i1 to i32
    %c0_i32_0 = arith.constant 0 : i32
    %5 = arith.cmpi ne, %4, %c0_i32_0 : i32
    scf.if %5 {
      %cst = arith.constant 0.000000e+00 : f32
      %14 = vector.broadcast %cst : f32 to vector<8x128xf32>
      %c0 = arith.constant 0 : index
      %c0_6 = arith.constant 0 : index
      %15 = vector.load %arg3[%c0, %c0_6] : memref<8x128xf32, #tpu.memory_space<vmem>>, vector<8x128xf32>
      tpu.vector_store %arg3[%c0, %c0_6], %14 {strides = array<i32>} : memref<8x128xf32, #tpu.memory_space<vmem>>, vector<8x128xf32>,
    } else {
    }
    %c1_i32_1 = arith.constant 1 : i32
    %6 = arith.addi %1, %c1_i32_1 : i32
    %c2048_i32_2 = arith.constant 2048 : i32
    %7 = arith.muli %6, %c2048_i32_2 : i32
    %c2048_i32_3 = arith.constant 2048 : i32
    %8 = arith.cmpi sgt, %7, %c2048_i32_3 : i32
    %9 = arith.extui %8 : i1 to i32
    %c0_i32_4 = arith.constant 0 : i32
    %10 = arith.cmpi ne, %9, %c0_i32_4 : i32
    scf.if %10 {
      %c0 = arith.constant 0 : index
      %c0_6 = arith.constant 0 : index
      %14 = vector.load %arg2[%c0, %c0_6] : memref<16x128xf32, #tpu.memory_space<vmem>>, vector<16x128xf32>
      %15 = tpu.iota {dimensions = array<i32: 0>} : vector<16x128xi32>
      %16 = tpu.iota {dimensions = array<i32: 1>} : vector<16x128xi32>
      %c128_i32 = arith.constant 128 : i32
      %17 = vector.broadcast %c128_i32 : i32 to vector<16x128xi32>
      %18 = arith.muli %15, %17 : vector<16x128xi32>
      %19 = vector.broadcast %2 : i32 to vector<16x128xi32>
      %20 = arith.addi %19, %18 : vector<16x128xi32>
      %21 = arith.addi %20, %16 : vector<16x128xi32>
      %c2048_i32_7 = arith.constant 2048 : i32
      %22 = vector.broadcast %c2048_i32_7 : i32 to vector<16x128xi32>
      %23 = arith.cmpi slt, %21, %22 : vector<16x128xi32>
      %cst = arith.constant 5.000000e-01 : f32
      %24 = vector.broadcast %cst : f32 to vector<16x128xf32>
      %25 = arith.select %23, %14, %24 : vector<16x128xi1>, vector<16x128xf32>
      %26 = math.log %25 : vector<16x128xf32>
      %cst_8 = arith.constant -1.000000e+02 : f32
      %27 = vector.broadcast %cst_8 : f32 to vector<16x128xf32>
      %28 = arith.maximumf %26, %27 : vector<16x128xf32>
      %cst_9 = arith.constant 0.000000e+00 : f32
      %29 = vector.broadcast %cst_9 : f32 to vector<16x128xf32>
      %30 = arith.subf %29, %28 : vector<16x128xf32>
      %cst_10 = arith.constant 0.000000e+00 : f32
      %31 = vector.broadcast %cst_10 : f32 to vector<16x128xf32>
      %32 = arith.select %23, %30, %31 : vector<16x128xi1>, vector<16x128xf32>
      %c0_11 = arith.constant 0 : index
      %c0_12 = arith.constant 0 : index
      %33 = vector.load %arg3[%c0_11, %c0_12] : memref<8x128xf32, #tpu.memory_space<vmem>>, vector<8x128xf32>
      %34 = vector.shape_cast %32 : vector<16x128xf32> to vector<2x8x128xf32>
      %cst_13 = arith.constant dense<0.000000e+00> : vector<8x128xf32>
      %35 = vector.multi_reduction <add>, %34, %cst_13 [0] : vector<2x8x128xf32> to vector<8x128xf32>
      %36 = arith.addf %33, %35 : vector<8x128xf32>
      %c0_14 = arith.constant 0 : index
      %c0_15 = arith.constant 0 : index
      %37 = vector.load %arg3[%c0_14, %c0_15] : memref<8x128xf32, #tpu.memory_space<vmem>>, vector<8x128xf32>
      tpu.vector_store %arg3[%c0_14, %c0_15], %36 {strides = array<i32>} : memref<8x128xf32, #tpu.memory_space<vmem>>, vector<8x128xf32>,
    } else {
    }
    %true = arith.constant true
    %11 = arith.xori %8, %true : i1
    %12 = arith.extui %11 : i1 to i32
    %c0_i32_5 = arith.constant 0 : i32
    %13 = arith.cmpi ne, %12, %c0_i32_5 : i32
    scf.if %13 {
      %c0 = arith.constant 0 : index
      %c0_6 = arith.constant 0 : index
      %14 = vector.load %arg2[%c0, %c0_6] : memref<16x128xf32, #tpu.memory_space<vmem>>, vector<16x128xf32>
      %15 = math.log %14 : vector<16x128xf32>
      %cst = arith.constant -1.000000e+02 : f32
      %16 = vector.broadcast %cst : f32 to vector<16x128xf32>
      %17 = arith.maximumf %15, %16 : vector<16x128xf32>
      %cst_7 = arith.constant 0.000000e+00 : f32
      %18 = vector.broadcast %cst_7 : f32 to vector<16x128xf32>
      %19 = arith.subf %18, %17 : vector<16x128xf32>
      %c0_8 = arith.constant 0 : index
      %c0_9 = arith.constant 0 : index
      %20 = vector.load %arg3[%c0_8, %c0_9] : memref<8x128xf32, #tpu.memory_space<vmem>>, vector<8x128xf32>
      %21 = vector.shape_cast %19 : vector<16x128xf32> to vector<2x8x128xf32>
      %cst_10 = arith.constant dense<0.000000e+00> : vector<8x128xf32>
      %22 = vector.multi_reduction <add>, %21, %cst_10 [0] : vector<2x8x128xf32> to vector<8x128xf32>
      %23 = arith.addf %20, %22 : vector<8x128xf32>
      %c0_11 = arith.constant 0 : index
      %c0_12 = arith.constant 0 : index
      %24 = vector.load %arg3[%c0_11, %c0_12] : memref<8x128xf32, #tpu.memory_space<vmem>>, vector<8x128xf32>
      tpu.vector_store %arg3[%c0_11, %c0_12], %23 {strides = array<i32>} : memref<8x128xf32, #tpu.memory_space<vmem>>, vector<8x128xf32>,
    } else {
    }
    return
  }
  func.func @transform_0(%arg0: i32, %arg1: i32) -> (i32, i32) {
    %c1_i32 = arith.constant 1 : i32
    %0 = arith.muli %arg0, %c1_i32 : i32
    %1 = arith.addi %0, %arg1 : i32
    %c0_i32 = arith.constant 0 : i32
    %2 = arith.minsi %1, %c0_i32 : i32
    %c0_i32_0 = arith.constant 0 : i32
    %c0_i32_1 = arith.constant 0 : i32
    return %2, %c0_i32_0 : i32, i32
  }
  func.func @transform_1(%arg0: i32, %arg1: i32) -> (i32, i32) {
    %c0_i32 = arith.constant 0 : i32
    %c0_i32_0 = arith.constant 0 : i32
    return %arg0, %c0_i32 : i32, i32
  }
}

</mosaic_0001>

<bundles_post_ra>
// kernel: tpu_custom_call.1
= control target key start
LH: loop header
LB: loop body
LE: loop exit
PB: predicated region body
PF: predicated region fallthrough
CT: control target
= control target key end

     0   :  { %6 = vsyncpa [#allocation3], 0  ;;  %s198_s0 = inlined_call_operand.hbm [shape: f32[16,128], index: 0, kind: input, shape index: {}]   ;;  %s199_s1 = inlined_call_operand.hbm [shape: f32[8,128], index: 1, kind: output, shape index: {}]  }
   0x1   :  { %7 = vsyncpa [#allocation4], 0  ;;  %s18_s8 = sshll.u32 %s198_s0, 4  ;;  %s178_s9 = smov [#allocation2]   ;;  %s19_s8 = int_to_ptr.hbm [resolvable:$true] %s18_s8 }
   0x2   :  { %s20_s10 = sshll.u32 %s178_s9, 4  ;;  %s179_s11 = smov 128   ;;  %s21_s10 = int_to_ptr.vmem [resolvable:$true] %s20_s10 }
   0x3   :  { %s180_s12 = smov 8  }
   0x4   :  { %26 = dma.hbm_to_vmem [thread:$0]  %s19_s8, 256, %s21_s10, [#allocation3], %s179_s11, %s179_s11, %s180_s12  }
   0x5   :  { %174 = dma.done.wait [#allocation3], 256  }
   0x6   :  { %175 = vsyncadd [#allocation3], 4294967040  ;;  %v84_v0 = vld [vmem:[#allocation2] sm:$0xff]  ;;  %v85_v1 = vld [vmem:[#allocation2 + $0x8] sm:$0xff]  ;;  %s181_s0 = smov [#allocation5]   ;;  %s105_s16 = sshll.u32 %s199_s1, 4  ;;  %s106_s16 = int_to_ptr.hbm [resolvable:$true] %s105_s16 }
   0x7   :  { %122 = vlog2.f32 %v84_v0  ;;  %s103_s13 = sshll.u32 %s181_s0, 4  ;;  %s104_s13 = int_to_ptr.vmem [resolvable:$true] %s103_s13 }
   0x8   :  { %124 = vlog2.f32 %v85_v1 }
   0xd   :  { %v123_v2 = vpop.eup %122 }
   0xe   :  { %v125_v3 = vpop.eup %124  ;;  %v87_v4 = vmul.f32 0.6931472, %v123_v2 }
   0xf   :  { %v89_v5 = vmul.f32 0.6931472, %v125_v3 }
  0x10   :  { %v90_v6 = vmax.f32 %v87_v4, -100.0 }
  0x11   :  { %v91_v7 = vmax.f32 %v89_v5, -100.0 }
  0x12   :  { %v92_v8 = vsub.f32 0.0, %v90_v6 }
  0x13   :  { %v93_v9 = vsub.f32 0.0, %v91_v7 }
  0x15   :  { %v95_v10 = vadd.f32 %v93_v9, %v92_v8 }
  0x17   :  { %97 = vst [vmem:[#allocation5] sm:$0xff] %v95_v10 }
  0x18   :  { %108 = dma.vmem_to_hbm [thread:$0]  %s104_s13, 128, %s106_s16, [#allocation4]  }
  0x19   :  { %176 = dma.done.wait [#allocation4], 128  }
  0x1a   :  { %177 = vsyncadd [#allocation4], 4294967168 }
  0x1b   :  { %113 = vsyncpa [#allocation3], 1 }
  0x1c   :  { %114 = vsyncpa [#allocation4], 1 }

</bundles_post_ra>
